<compile_context>
chip_gen: v6e
topology: v6e:2x2x1
jax: 0.10.0
libtpu: 0.0.40
codegen_flags: <defaults>
</compile_context>

<pallas_src>
import functools

import jax
import jax.numpy as jnp
from jax.experimental import pallas as pl
from jax.experimental.pallas import tpu as pltpu


# ----------------------------------------------------------------------------
# Kernels
# ----------------------------------------------------------------------------
def se_block_kernel(x_ref, w1t_ref, b1_ref, w2t_ref, b2_ref, o_ref):
    """Single-pass SE block: whole (BN, C, L) slab resident in VMEM."""
    x = x_ref[...]                                        # native dtype slab
    inv_l = 1.0 / x.shape[-1]
    # squeeze: f32-accumulating reduce over L (no full f32 copy of the slab)
    m = jnp.sum(x, axis=-1, dtype=jnp.float32) * inv_l    # (BN, C)

    # excitation MLP, batched over the BN samples in this block (tiny matmuls)
    s = jnp.dot(m, w1t_ref[...], preferred_element_type=jnp.float32) + b1_ref[...]
    s = jnp.maximum(s, 0.0)                               # ReLU, (BN, H)
    g = jnp.dot(s, w2t_ref[...], preferred_element_type=jnp.float32) + b2_ref[...]
    g = jax.nn.sigmoid(g)                                 # (BN, C), f32

    # broadcast-add the gate over L in the input dtype
    o_ref[...] = x + g.astype(x.dtype)[:, :, None]


def _se_gate_kernel(x_ref, w1t_ref, b1_ref, w2t_ref, b2_ref, g_ref, acc_ref,
                    *, l_total, tl):
    """Phase 1 of the L-tiled path: streaming sum over L, then gate MLP."""
    l = pl.program_id(1)

    @pl.when(l == 0)
    def _():
        acc_ref[...] = jnp.zeros_like(acc_ref)

    x = x_ref[...]                                        # (1, C, tl)
    if l_total % tl != 0:
        # Mask the padded tail of the ragged last L tile before accumulating.
        col = jax.lax.broadcasted_iota(jnp.int32, x.shape, dimension=2) + l * tl
        x = jnp.where(col < l_total, x, jnp.zeros((), x.dtype))
    acc_ref[...] += jnp.sum(x, axis=-1, dtype=jnp.float32)

    @pl.when(l == pl.num_programs(1) - 1)
    def _():
        m = acc_ref[...] * (1.0 / l_total)                # (1, C)
        s = jnp.dot(m, w1t_ref[...], preferred_element_type=jnp.float32) + b1_ref[...]
        s = jnp.maximum(s, 0.0)
        g = jnp.dot(s, w2t_ref[...], preferred_element_type=jnp.float32) + b2_ref[...]
        g = jax.nn.sigmoid(g)                             # (1, C)
        g_ref[...] = g[:, None, :]                        # (1, 1, C)


def _se_apply_kernel(x_ref, g_ref, o_ref):
    """Phase 2 of the L-tiled path: out = x + gate (broadcast over L)."""
    x = x_ref[...]                                        # (1, C, tl)
    g = g_ref[...][:, 0, :]                               # (1, C) f32
    o_ref[...] = x + g.astype(x.dtype)[:, :, None]


# ----------------------------------------------------------------------------
# Wrapper
# ----------------------------------------------------------------------------
def _vmem_capacity_bytes():
    try:
        cap = getattr(pltpu.get_tpu_info(), "vmem_capacity_bytes", None)
        if cap:
            return int(cap)
    except Exception:
        pass
    return 64 << 20  # safe fallback (assume the smallest, v7x-sized, VMEM)


def _se_block_batched(x, w1t, b1_2d, w2t, b2_2d, block_bytes_cap, vmem_limit_cap):
    N, C, L = x.shape
    H = w1t.shape[1]
    itemsize = x.dtype.itemsize
    sample_bytes = C * L * itemsize

    bn_cap = max(1, block_bytes_cap // sample_bytes)
    # Keep the grid >= ~4 steps (>= N for tiny N) so double-buffering actually
    # overlaps DMA with compute and v7x can shard the batch axis over 2 TCs.
    min_steps = min(N, 4)
    steps = max(min_steps, pl.cdiv(N, bn_cap))
    BN = max(1, min(pl.cdiv(N, steps), bn_cap, N))
    grid = (pl.cdiv(N, BN),)   # ragged last block (N % BN != 0) is masked by Pallas

    block_bytes = BN * sample_bytes
    weight_bytes = 4 * (C * H + H + H * C + C)
    vmem_limit = int(min(max(6 * block_bytes + weight_bytes + (2 << 20), 32 << 20),
                         vmem_limit_cap))

    cost = pl.CostEstimate(
        flops=int(2 * N * C * L + 4 * N * C * H),
        transcendentals=int(N * C),
        bytes_accessed=int(2 * N * C * L * itemsize + weight_bytes),
    )

    return pl.pallas_call(
        se_block_kernel,
        out_shape=jax.ShapeDtypeStruct((N, C, L), x.dtype),
        grid_spec=pltpu.PrefetchScalarGridSpec(
            num_scalar_prefetch=0,
            grid=grid,
            in_specs=[
                pl.BlockSpec((BN, C, L), lambda i: (i, 0, 0)),   # x: BN samples/step
                pl.BlockSpec((C, H), lambda i: (0, 0)),          # conv1 weight (pre-T)
                pl.BlockSpec((1, H), lambda i: (0, 0)),          # conv1 bias
                pl.BlockSpec((H, C), lambda i: (0, 0)),          # conv2 weight (pre-T)
                pl.BlockSpec((1, C), lambda i: (0, 0)),          # conv2 bias
            ],
            out_specs=pl.BlockSpec((BN, C, L), lambda i: (i, 0, 0)),
        ),
        compiler_params=pltpu.CompilerParams(
            dimension_semantics=("parallel",),
            vmem_limit_bytes=vmem_limit,
        ),
        cost_estimate=cost,
    )(x, w1t, b1_2d, w2t, b2_2d)


def _se_block_l_tiled(x, w1t, b1_2d, w2t, b2_2d, block_bytes_cap, vmem_limit_cap):
    """Two-pass streaming path for samples whose (C, L) slab exceeds the block budget."""
    N, C, L = x.shape
    H = w1t.shape[1]
    itemsize = x.dtype.itemsize

    tl = max(128, (block_bytes_cap // (C * itemsize)) // 128 * 128)
    tl = min(L, tl)
    n_l = pl.cdiv(L, tl)

    tile_bytes = C * tl * itemsize
    vmem_limit = int(min(max(6 * tile_bytes + (2 << 20), 32 << 20), vmem_limit_cap))

    # Phase 1: streaming squeeze + tiny excitation MLP -> per-sample gate (N, 1, C).
    gate_kernel = functools.partial(_se_gate_kernel, l_total=L, tl=tl)
    g = pl.pallas_call(
        gate_kernel,
        out_shape=jax.ShapeDtypeStruct((N, 1, C), jnp.float32),
        grid_spec=pltpu.PrefetchScalarGridSpec(
            num_scalar_prefetch=0,
            grid=(N, n_l),
            in_specs=[
                pl.BlockSpec((1, C, tl), lambda i, l: (i, 0, l)),
                pl.BlockSpec((C, H), lambda i, l: (0, 0)),
                pl.BlockSpec((1, H), lambda i, l: (0, 0)),
                pl.BlockSpec((H, C), lambda i, l: (0, 0)),
                pl.BlockSpec((1, C), lambda i, l: (0, 0)),
            ],
            out_specs=pl.BlockSpec((1, 1, C), lambda i, l: (i, 0, 0)),
            scratch_shapes=[pltpu.VMEM((1, C), jnp.float32)],
        ),
        compiler_params=pltpu.CompilerParams(
            dimension_semantics=("parallel", "arbitrary"),
            vmem_limit_bytes=vmem_limit,
        ),
        cost_estimate=pl.CostEstimate(
            flops=int(N * C * L + 4 * N * C * H),
            transcendentals=int(N * C),
            bytes_accessed=int(N * C * L * itemsize + 4 * N * C),
        ),
    )(x, w1t, b1_2d, w2t, b2_2d)

    # Phase 2: gated broadcast-add, tiled over (N, L).
    out = pl.pallas_call(
        _se_apply_kernel,
        out_shape=jax.ShapeDtypeStruct((N, C, L), x.dtype),
        grid_spec=pltpu.PrefetchScalarGridSpec(
            num_scalar_prefetch=0,
            grid=(N, n_l),
            in_specs=[
                pl.BlockSpec((1, C, tl), lambda i, l: (i, 0, l)),
                pl.BlockSpec((1, 1, C), lambda i, l: (i, 0, 0)),
            ],
            out_specs=pl.BlockSpec((1, C, tl), lambda i, l: (i, 0, l)),
        ),
        compiler_params=pltpu.CompilerParams(
            dimension_semantics=("parallel", "parallel"),
            vmem_limit_bytes=vmem_limit,
        ),
        cost_estimate=pl.CostEstimate(
            flops=int(N * C * L),
            transcendentals=0,
            bytes_accessed=int(2 * N * C * L * itemsize + 4 * N * C),
        ),
    )(x, g)
    return out


def se_block_forward(x, w1, b1, w2, b2, *, block_bytes_cap=None):
    """x: (N, C, L); w1: (H, C); b1: (H,); w2: (C, H); b2: (C,)."""
    N, C, L = x.shape
    H = w1.shape[0]
    itemsize = x.dtype.itemsize

    # Trace-time (free) weight transposes so the kernel does plain row-major dots.
    w1t = jnp.transpose(w1)          # (C, H)
    w2t = jnp.transpose(w2)          # (H, C)
    b1_2d = b1.reshape(1, H)
    b2_2d = b2.reshape(1, C)

    # Generation-aware VMEM budgeting (v7x: 64 MiB physical -> 2 MiB blocks /
    # <=48 MiB scoped limit; v5e/v6e: 128 MiB -> 4 MiB blocks / <=64 MiB limit).
    vmem_cap = _vmem_capacity_bytes()
    vmem_limit_cap = int(min(64 << 20, (vmem_cap * 3) // 4))
    if block_bytes_cap is None:
        block_bytes_cap = int(min(4 << 20, max(1 << 20, vmem_cap // 32)))

    # TODO(synk): pad L to a multiple of 128 in the wrapper when L % 128 != 0 so
    # output stores stay lane-dense (unmasked vst).

    sample_bytes = C * L * itemsize
    if sample_bytes > block_bytes_cap:
        return _se_block_l_tiled(x, w1t, b1_2d, w2t, b2_2d,
                                 block_bytes_cap, vmem_limit_cap)
    return _se_block_batched(x, w1t, b1_2d, w2t, b2_2d,
                             block_bytes_cap, vmem_limit_cap)


def se_block_reference(x, w1, b1, w2, b2):
    m = jnp.mean(x, axis=-1)                              # (N, C)
    s = jnp.maximum(m @ w1.T + b1, 0.0)                   # (N, H)
    g = jax.nn.sigmoid(s @ w2.T + b2)                     # (N, C)
    return x + g[:, :, None]


if __name__ == "__main__":
    # Module hyperparams: in_layer = C, out_layer // 8 = H
    N, C, L = 2, 16, 128
    out_layer = 32
    H = out_layer // 8

    key = jax.random.PRNGKey(0)
    kx, kw1, kb1, kw2, kb2, kx2, kx3 = jax.random.split(key, 7)

    # Conv1d weights are (out_ch, in_ch, 1); kernel dim squeezed out here.
    w1 = jax.random.normal(kw1, (H, C), dtype=jnp.float32) * 0.1
    b1 = jax.random.normal(kb1, (H,), dtype=jnp.float32) * 0.1
    w2 = jax.random.normal(kw2, (C, H), dtype=jnp.float32) * 0.1
    b2 = jax.random.normal(kb2, (C,), dtype=jnp.float32) * 0.1

    # 1) batched single-pass path (grid splits the batch -> 2 pipelined steps)
    x = jax.random.normal(kx, (N, C, L), dtype=jnp.float32)
    out = jax.block_until_ready(se_block_forward(x, w1, b1, w2, b2))
    ref = se_block_reference(x, w1, b1, w2, b2)
    assert out.shape == (N, C, L)
    assert jnp.allclose(out, ref, atol=1e-5, rtol=1e-5), "batched path mismatch"

    # 2) awkward batch size (N=5 -> ragged last block handled by Pallas masking)
    x3 = jax.random.normal(kx3, (5, C, L), dtype=jnp.float32)
    out3 = jax.block_until_ready(se_block_forward(x3, w1, b1, w2, b2))
    ref3 = se_block_reference(x3, w1, b1, w2, b2)
    assert jnp.allclose(out3, ref3, atol=1e-5, rtol=1e-5), "ragged-N path mismatch"

    # 3) L-tiled streaming path (forced via a tiny per-block byte budget)
    x2 = jax.random.normal(kx2, (N, C, 512), dtype=jnp.float32)
    out2 = jax.block_until_ready(
        se_block_forward(x2, w1, b1, w2, b2, block_bytes_cap=C * 128 * 4))
    ref2 = se_block_reference(x2, w1, b1, w2, b2)
    assert jnp.allclose(out2, ref2, atol=1e-5, rtol=1e-5), "L-tiled path mismatch"

    print("KERNEL_OK")
</pallas_src>

<mosaic_0001>
module attributes {stable_mosaic.version = 11 : i64} {
  func.func @se_block_kernel(%arg0: i32, %arg1: memref<1x16x128xf32, #tpu.memory_space<vmem>>, %arg2: memref<16x4xf32, #tpu.memory_space<vmem>>, %arg3: memref<1x4xf32, #tpu.memory_space<vmem>>, %arg4: memref<4x16xf32, #tpu.memory_space<vmem>>, %arg5: memref<1x16xf32, #tpu.memory_space<vmem>>, %arg6: memref<1x16x128xf32, #tpu.memory_space<vmem>>) attributes {dimension_semantics = [#tpu.dimension_semantics<parallel>], iteration_bounds = array<i64: 2>, scalar_prefetch = 0 : i64, scratch_operands = 0 : i64, tpu.core_type = #tpu.core_type<tc>, window_params = [{transform_indices = @transform_0, window_bounds = array<i64: 1, 16, 128>}, {pipeline_mode = #tpu.pipeline_mode<synchronous>, transform_indices = @transform_1, window_bounds = array<i64: 16, 4>}, {pipeline_mode = #tpu.pipeline_mode<synchronous>, transform_indices = @transform_2, window_bounds = array<i64: 1, 4>}, {pipeline_mode = #tpu.pipeline_mode<synchronous>, transform_indices = @transform_3, window_bounds = array<i64: 4, 16>}, {pipeline_mode = #tpu.pipeline_mode<synchronous>, transform_indices = @transform_4, window_bounds = array<i64: 1, 16>}, {transform_indices = @transform_5, window_bounds = array<i64: 1, 16, 128>}]} {
    %c0 = arith.constant 0 : index
    %c0_0 = arith.constant 0 : index
    %c0_1 = arith.constant 0 : index
    %0 = vector.load %arg1[%c0, %c0_0, %c0_1] : memref<1x16x128xf32, #tpu.memory_space<vmem>>, vector<1x16x128xf32>
    %cst = arith.constant dense<0.000000e+00> : vector<1x16xf32>
    %1 = vector.multi_reduction <add>, %0, %cst [2] : vector<1x16x128xf32> to vector<1x16xf32>
    %cst_2 = arith.constant 7.812500e-03 : f32
    %2 = vector.broadcast %cst_2 : f32 to vector<1x16xf32>
    %3 = arith.mulf %1, %2 : vector<1x16xf32>
    %c0_3 = arith.constant 0 : index
    %c0_4 = arith.constant 0 : index
    %4 = vector.load %arg2[%c0_3, %c0_4] : memref<16x4xf32, #tpu.memory_space<vmem>>, vector<16x4xf32>
    %cst_5 = arith.constant dense<0.000000e+00> : vector<1x4xf32>
    %5 = tpu.matmul %3, %4, %cst_5 {dimension_numbers = #tpu.dot_dimension_numbers<[1], [0], [0], [1], [0, 0, 1, 1], [], []>} : vector<1x16xf32>, vector<16x4xf32>, vector<1x4xf32> -> vector<1x4xf32>
    %c0_6 = arith.constant 0 : index
    %c0_7 = arith.constant 0 : index
    %6 = vector.load %arg3[%c0_6, %c0_7] : memref<1x4xf32, #tpu.memory_space<vmem>>, vector<1x4xf32>
    %7 = arith.addf %5, %6 : vector<1x4xf32>
    %cst_8 = arith.constant 0.000000e+00 : f32
    %8 = vector.broadcast %cst_8 : f32 to vector<1x4xf32>
    %9 = arith.maximumf %7, %8 : vector<1x4xf32>
    %c0_9 = arith.constant 0 : index
    %c0_10 = arith.constant 0 : index
    %10 = vector.load %arg4[%c0_9, %c0_10] : memref<4x16xf32, #tpu.memory_space<vmem>>, vector<4x16xf32>
    %cst_11 = arith.constant dense<0.000000e+00> : vector<1x16xf32>
    %11 = tpu.matmul %9, %10, %cst_11 {dimension_numbers = #tpu.dot_dimension_numbers<[1], [0], [0], [1], [0, 0, 1, 1], [], []>} : vector<1x4xf32>, vector<4x16xf32>, vector<1x16xf32> -> vector<1x16xf32>
    %c0_12 = arith.constant 0 : index
    %c0_13 = arith.constant 0 : index
    %12 = vector.load %arg5[%c0_12, %c0_13] : memref<1x16xf32, #tpu.memory_space<vmem>>, vector<1x16xf32>
    %13 = arith.addf %11, %12 : vector<1x16xf32>
    %14 = arith.negf %13 : vector<1x16xf32>
    %15 = math.exp %14 : vector<1x16xf32>
    %cst_14 = arith.constant 1.000000e+00 : f32
    %16 = vector.broadcast %cst_14 : f32 to vector<1x16xf32>
    %17 = arith.addf %16, %15 : vector<1x16xf32>
    %18 = arith.divf %16, %17 : vector<1x16xf32>
    %19 = vector.shape_cast %18 : vector<1x16xf32> to vector<1x16x1xf32>
    %20 = vector.broadcast %19 : vector<1x16x1xf32> to vector<1x16x128xf32>
    %21 = arith.addf %0, %20 : vector<1x16x128xf32>
    %c0_15 = arith.constant 0 : index
    %c0_16 = arith.constant 0 : index
    %c0_17 = arith.constant 0 : index
    %22 = vector.load %arg6[%c0_15, %c0_16, %c0_17] : memref<1x16x128xf32, #tpu.memory_space<vmem>>, vector<1x16x128xf32>
    tpu.vector_store %arg6[%c0_15, %c0_16, %c0_17], %21 {strides = array<i32>} : memref<1x16x128xf32, #tpu.memory_space<vmem>>, vector<1x16x128xf32>,
    return
  }
  func.func @transform_0(%arg0: i32) -> (i32, i32, i32) {
    %c0_i32 = arith.constant 0 : i32
    %c0_i32_0 = arith.constant 0 : i32
    %c0_i32_1 = arith.constant 0 : i32
    return %arg0, %c0_i32, %c0_i32_0 : i32, i32, i32
  }
  func.func @transform_1(%arg0: i32) -> (i32, i32) {
    %c0_i32 = arith.constant 0 : i32
    %c0_i32_0 = arith.constant 0 : i32
    %c0_i32_1 = arith.constant 0 : i32
    return %c0_i32, %c0_i32_0 : i32, i32
  }
  func.func @transform_2(%arg0: i32) -> (i32, i32) {
    %c0_i32 = arith.constant 0 : i32
    %c0_i32_0 = arith.constant 0 : i32
    %c0_i32_1 = arith.constant 0 : i32
    return %c0_i32, %c0_i32_0 : i32, i32
  }
  func.func @transform_3(%arg0: i32) -> (i32, i32) {
    %c0_i32 = arith.constant 0 : i32
    %c0_i32_0 = arith.constant 0 : i32
    %c0_i32_1 = arith.constant 0 : i32
    return %c0_i32, %c0_i32_0 : i32, i32
  }
  func.func @transform_4(%arg0: i32) -> (i32, i32) {
    %c0_i32 = arith.constant 0 : i32
    %c0_i32_0 = arith.constant 0 : i32
    %c0_i32_1 = arith.constant 0 : i32
    return %c0_i32, %c0_i32_0 : i32, i32
  }
  func.func @transform_5(%arg0: i32) -> (i32, i32, i32) {
    %c0_i32 = arith.constant 0 : i32
    %c0_i32_0 = arith.constant 0 : i32
    %c0_i32_1 = arith.constant 0 : i32
    return %arg0, %c0_i32, %c0_i32_0 : i32, i32, i32
  }
}

</mosaic_0001>

<bundles_post_ra>
// kernel: tpu_custom_call.1
= control target key start
LH: loop header
LB: loop body
LE: loop exit
PB: predicated region body
PF: predicated region fallthrough
CT: control target
= control target key end

     0   :  { %10 = vsyncpa [#allocation3], 0  ;;  %s929_s0 = inlined_call_operand.hbm [shape: f32[2,16,128], index: 0, kind: input, shape index: {}]   ;;  %s930_s1 = inlined_call_operand.vmem [shape: f32[16,4], index: 1, kind: input, shape index: {}]   ;;  %s931_s2 = inlined_call_operand.vmem [shape: f32[1,4], index: 2, kind: input, shape index: {}]   ;;  %s932_s3 = inlined_call_operand.vmem [shape: f32[4,16], index: 3, kind: input, shape index: {}]   ;;  %s933_s4 = inlined_call_operand.vmem [shape: f32[1,16], index: 4, kind: input, shape index: {}]   ;;  %s934_s5 = inlined_call_operand.hbm [shape: f32[2,16,128], index: 5, kind: output, shape index: {}]  }
   0x1   :  { %12 = vsyncpa [#allocation3 + $0x1], 0 }
   0x2   :  { %13 = vsyncpa [#allocation4], 0 }
   0x3   :  { %15 = vsyncpa [#allocation4 + $0x1], 0  ;;  %s756_s18 = smov 0   ;;  %s758_s19 = smov 0  }
   0x4   :  { %s760_s20 = smov 0   ;;  %s762_s21 = smov 0  }
   0x5 LB: > { %s777_s22 = sadd.s32 4294967295, %s716_s21   ;;  %s531_s23 = sadd.s32 4294967294, %s716_s21   ;;  %s716_s21 = sphi %s762_s21, %s949_s21   ;;  %s712_s20 = sphi %s760_s20, %s948_s20   ;;  %s708_s19 = sphi %s758_s19, %s947_s19   ;;  %s704_s18 = sphi %s756_s18, %s946_s18  }
   0x6   : > { %s781_s24 = sadd.s32 1, %s716_s21   ;;  %s28_s25 = sadd.s32 1, %s712_s20 }
   0x7   : > { %s25_s26 = ssub.s32 %s716_s21, %s781_s24  ;;  %p35_p0 = scmp.ne.s32.totalorder %s712_s20, %s708_s19 }
   0x8   : > { %p26_p1 = scmp.eq.s32.totalorder %s25_s26, 0  ;;  %p36_p2 = scmp.eq.s32.totalorder %s716_s21, 0 }
   0x9   : > { %p41_p3 = scmp.ne.s32.totalorder %s708_s19, %s704_s18  ;;  %p42_p4 = scmp.eq.s32.totalorder %s777_s22, 0 }
   0xa   : > { %s793_s27 = scalar_select %p26_p1, %s712_s20, %s28_s25  }
   0xb   : > { %p795_p5 = por %p36_p2, %p35_p0  ;;  %p799_p6 = por %p42_p4, %p41_p3 }
   0xc   : > { %p149_p7 = scmp.eq.s32.totalorder %s777_s22, 1  ;;  %p155_p8 = scmp.eq.s32.totalorder %s531_s23, 1 }
   0xd   : > { %s938_s29 = scalar_select %p799_p6, 1, 0 }
   0xe   : > { %p580_p10 = scmp.lt.s32.totalorder %s716_s21, 2  ;;  %p806_p11 = por %p149_p7, %p35_p0 }
   0xf   : > { %p810_p12 = por %p155_p8, %p41_p3  ;;  %s187_s7 = sand.u32 1, %s712_s20  }
  0x10   : > { %s939_s30 = scalar_select %p806_p11, 1, 0 }
  0x11   : > { %s940_s6 = scalar_select %p810_p12, 1, 0 }
  0x12   : > { %s549_s8 = sshll.u32 %s716_s21, 8  ;;  %s534_s9 = sshll.u32 %s187_s7, 4 }
  0x13   : > { %s819_s12 = scalar_lea.hbm %s929_s0, %s549_s8  ;;  %s191_s13 = scalar_lea.vmem [#allocation2], %s534_s9 }
  0x14   : > { %s198_s14 = sshll.u32 %s191_s13, 4  ;;  %p823_p13 = pnand %p580_p10, %p795_p5  ;;  %s827_s14 = int_to_ptr.vmem [resolvable:$true] %s198_s14 }
  0x15   : > { %s829_s16 = scalar_lea.sflag [#allocation3], %s187_s7  ;;  %s624_s17 = scalar_lea.hbm %s819_s12, 256 }
  0x16   : > { %p625_p0 = scmp.ne.s32.totalorder %s819_s12, %s624_s17  ;;  %p626_p1 = pneg %p823_p13 }
  0x17   : > { %s629_s26 = scalar_lea.hbm %s929_s0, 512  ;;  %p630_p4 = scmp.lt.s32.totalorder %s819_s12, %s929_s0 }
  0x18   : > { %p627_p2 = pnand %p626_p1, %p625_p0  ;;  %p631_p5 = scmp.lt.s32.totalorder %s629_s26, %s624_s17 }
  0x1a   : > { %p628_p3 = pneg %p627_p2  ;;  %p632_p7 = por %p631_p5, %p630_p4 }
  0x1c   : > { %p633_p8 = pnand %p632_p7, %p628_p3 }
  0x1e   : > { %636 = shalt.err (!%p633_p8)
}
  0x1f   : > { %s637_s7 = scalar_lea.vmem %s827_s14, 256  ;;  %s718_s9 = smov [#allocation2]  }
  0x20   : > { %p638_p10 = scmp.ne.s32.totalorder %s827_s14, %s637_s7  ;;  %s642_s10 = sshll.u32 %s718_s9, 4  ;;  %s643_s10 = int_to_ptr.vmem [resolvable:$false] %s642_s10 }
  0x21   : > { %s644_s11 = scalar_lea.vmem %s643_s10, 512  ;;  %p645_p2 = scmp.lt.s32.totalorder %s827_s14, %s643_s10 }
  0x22   : > { %p640_p9 = pnand %p638_p10, %p626_p1  ;;  %p646_p12 = scmp.lt.s32.totalorder %s644_s11, %s637_s7 }
  0x24   : > { %p641_p0 = pneg %p640_p9  ;;  %p647_p11 = por %p646_p12, %p645_p2 }
  0x26   : > { %p648_p6 = pnand %p647_p11, %p641_p0 }
  0x28   : > { %651 = shalt.err (!%p648_p6)
}
  0x29   : > { %s719_s13 = smov 128   ;;  %s720_s17 = smov 8  }
  0x2a   : > { %575 = dma.hbm_to_vmem [thread:$0]  (!%p823_p13), %s819_s12, 256, %s827_s14, %s829_s16, %s719_s13, %s719_s13, %s720_s17  }
  0x2b   : > { %p537_p9 = scmp.ge.s32.totalorder %s716_s21, 1  ;;  %p206_p1 = scmp.lt.s32.totalorder %s716_s21, 3 }
  0x2d   : > { %p207_p3 = pnand %p537_p9, %p206_p1 }
  0x2e   : > { %s853_s23 = sand.u32 (!%p207_p3), 1, %s708_s19   ;;  %p942_p6 = scmp.ne.s32.totalorder (!%p207_p3), %s938_s29, 0 }
  0x2f   : > { %210 = sbr.rel (%p207_p3) target bundleno = 762 (0x2fa), region = 40  ;;  %s538_s25 = sshll.u32 (!%p207_p3), %s853_s23, 4 }
  0x30   : > { %s213_s26 = scalar_lea.sflag (!%p207_p3), [#allocation3], %s853_s23  ;;  %s216_s28 = scalar_lea.vmem (!%p207_p3), [#allocation2], %s538_s25 }
  0x34   : > { %695 = dma.done.wait (%p942_p6), %s213_s26, 256  }
  0x35   : > { %697 = vsyncadd (%p942_p6), %s213_s26, 4294967040  ;;  %v243_v0 = vld [vmem:[%s216_s28] sm:$0xff]  ;;  %v244_v1 = vld [vmem:[%s216_s28 + $0x8] sm:$0xff]  ;;  %v721_v2 = vmov 0.0   ;;  %vm722_vm0 = vmmov 0   ;;  %v256_v5 = vlaneseq  ;;  %vm267_vm1 = vcmask 130112  }
  0x36   : > { %245 = vadd.xlane.f32.xlu0 %v243_v0  ;;  %556 = vmatprep.subr.mxu0 %v721_v2  ;;  %v252_v3 = vld [vmem:[%s930_s1 + $0x8] sm:$0xff]  ;;  %v251_v4 = vld [vmem:[%s930_s1] sm:$0xff]  ;;  %vm269_vm2 = vcmask 130048   ;;  %vm349_vm3 = vcmask 1043456   ;;  %vm345_vm4 = vcmask 31744   ;;  %s242_s13 = scalar_lea.vmem [#allocation5], %s538_s25 }
  0x37   : > { %563 = vmatprep.subr.mxu1 %v721_v2  ;;  %557 = vmatpush3.msra.mxu0 %v252_v3  ;;  %v257_v6 = vand.u32 127, %v256_v5  ;;  %v259_v7 = vshrl.u32 %v256_v5, 7  ;;  %v343_v18 = vld [vmem:[%s932_s3] sm:$0xf]  ;;  %s458_s17 = sshll.u32 %s242_s13, 4  ;;  %s550_s26 = sshll.u32 %s777_s22, 8  ;;  %s881_s17 = int_to_ptr.vmem [resolvable:$true] %s458_s17 }
  0x38   : > { %558 = vmatprep.subr.mxu0 %v721_v2  ;;  %560 = vmatprep.mubr.msk.f32.mxu0 %vm722_vm0, %v721_v2  ;;  %v253_v19 = vld [vmem:[%s931_s2] sm:$0x1]  ;;  %s886_s14 = scalar_lea.hbm %s934_s5, %s550_s26  ;;  %s445_s15 = scalar_lea.sflag [#allocation4], %s853_s23 }
  0x39   : > { %559 = vmatpush3.msra.mxu0 %v251_v4  ;;  %565 = vmatprep.mubr.msk.f32.mxu1 %vm722_vm0, %v721_v2  ;;  %v262_v8 = vadd.s32 4294967288, %v257_v6  ;;  %v260_v10 = vsub.s32 %v257_v6, %v259_v7  ;;  %v344_v24 = vld [vmem:[%s933_s4] sm:$0x1]  ;;  %v431_v31 = vsub.s32 0, %v259_v7  ;;  %s652_s25 = scalar_lea.vmem %s881_s17, 256  ;;  %p943_p12 = scmp.ne.s32.totalorder %s939_s30, 0 }
  0x3a   : > { %247 = vadd.xlane.f32.xlu0 %v244_v1  ;;  %564 = vmatpush3.msk.msra.mxu1 %vm349_vm3, %v343_v18  ;;  %p653_p11 = scmp.ne.s32.totalorder %s881_s17, %s652_s25  ;;  %s723_s22 = smov [#allocation5]  }
  0x3b   : > { %v265_v12 = vsub.s32 %v262_v8, %v259_v7  ;;  %s656_s16 = sshll.u32 %s723_s22, 4  ;;  %s657_s16 = int_to_ptr.vmem [resolvable:$false] %s656_s16 }
  0x3c   : > { %p654_p13 = pnand %p653_p11, %p943_p12  ;;  %s658_s29 = scalar_lea.vmem %s657_s16, 512 }
  0x3d   : > { %p659_p5 = scmp.lt.s32.totalorder %s881_s17, %s657_s16  ;;  %p660_p7 = scmp.lt.s32.totalorder %s658_s29, %s652_s25 }
  0x3e   : > { %p655_p4 = pneg %p654_p13 }
  0x3f   : > { %p661_p8 = por %p660_p7, %p659_p5 }
  0x41   : > { %p662_p10 = pnand %p661_p8, %p655_p4 }
  0xbf   : > { %v246_v9 = vpop.xlane.xlu0 %245 }
  0xc0   : > { %v249_v11 = vmul.f32 0.0078125, %v246_v9 }
  0xc2   : > { %v261_v15 = vrot.slane %v249_v11, %v260_v10 }
  0xc3   : > { %v248_v13 = vpop.xlane.xlu0 %247 }
  0xc4   : > { %v250_v14 = vmul.f32 0.0078125, %v248_v13 }
  0xc6   : > { %v266_v16 = vrot.slane %v250_v14, %v265_v12 }
  0xc8   : > { %v268_v17 = vsel %vm267_vm1, %v266_v16, %v261_v15 }
  0xc9   : > { %561 = vmatmul.mubr.msk.f32.vlgmr.msra.gmra.mxu0 %vm269_vm2, %v268_v17 }
 0x189   : > { %v338_v20 = vpop.f32.mrf.mxu0 }
 0x18a   : > { %v339_v21 = vadd.f32 %v338_v20, %v253_v19 }
 0x18b   : > { %v562_v22 = vpop.f32.mrf.mxu0 }
 0x18c   : > { %v342_v23 = vmax.f32 %v339_v21, 0.0 }
 0x18e   : > { %566 = vmatmul.mubr.msk.f32.vlgmr.msra.gmra.mxu1 %vm345_vm4, %v342_v23 }
 0x24e   : > { %v419_v25 = vpop.f32.mrf.mxu1 }
 0x24f   : > { %v420_v26 = vadd.f32 %v419_v25, %v344_v24 }
 0x250   : > { %v567_v27 = vpop.f32.mrf.mxu1 }
 0x251   : > { %v543_v28 = vmul.f32 -1.442695, %v420_v26 }
 0x253   : > { %620 = vpow2.f32 %v543_v28 }
 0x260   : > { %v621_v29 = vpop.eup %620 }
 0x261   : > { %v426_v30 = vadd.f32 1.0, %v621_v29 }
 0x263   : > { %622 = vrcp.f32 %v426_v30 }
 0x270   : > { %v623_v32 = vpop.eup %622 }
 0x271   : > { %v432_v33 = vrot.slane %v623_v32, %v431_v31 }
 0x273   : > { %434 = vbcast.lane.b32.xlu1 %v432_v33, 256 }
 0x277   : > { %438 = vbcast.lane.b32.xlu1 %v432_v33, 264 }
 0x2e5   : > { %v435_v34 = vpop.permute.xlu1 %434 }
 0x2e6   : > { %v440_v35 = vadd.f32 %v435_v34, %v243_v0 }
 0x2e8   : > { %442 = vst [vmem:[%s242_s13] sm:$0xff] %v440_v35 }
 0x2e9   : > { %v439_v36 = vpop.permute.xlu1 %438 }
 0x2ea   : > { %v441_v37 = vadd.f32 %v439_v36, %v244_v1 }
 0x2ec   : > { %443 = vst [vmem:[%s242_s13 + $0x8] sm:$0xff] %v441_v37 }
 0x2ed   : > { %665 = shalt.err (!%p662_p10)
}
 0x2ee   : > { %s666_s8 = scalar_lea.hbm %s886_s14, 256  ;;  %s670_s10 = scalar_lea.hbm %s934_s5, 512 }
 0x2ef   : > { %p667_p0 = scmp.ne.s32.totalorder %s886_s14, %s666_s8  ;;  %p671_p1 = scmp.lt.s32.totalorder %s886_s14, %s934_s5 }
 0x2f0   : > { %p672_p3 = scmp.lt.s32.totalorder %s670_s10, %s666_s8 }
 0x2f1   : > { %p668_p2 = pnand %p667_p0, %p943_p12 }
 0x2f2   : > { %p673_p6 = por %p672_p3, %p671_p1 }
 0x2f3   : > { %p669_p9 = pneg %p668_p2 }
 0x2f5   : > { %p674_p11 = pnand %p673_p6, %p669_p9 }
 0x2f7   : > { %677 = shalt.err (!%p674_p11)
}
 0x2f8   : > { %s724_s26 = smov 128   ;;  %s725_s28 = smov 8  }
 0x2f9   : > { %570 = dma.vmem_to_hbm [thread:$0]  (%p943_p12), %s881_s17, 256, %s886_s14, %s445_s15, %s724_s26, %s724_s26, %s725_s28  }
 0x2fa PF: > { %s473_s12 = sand.u32 1, %s704_s18   ;;  %p944_p13 = scmp.ne.s32.totalorder %s940_s6, 0 }
 0x2fb   : > { %p945_p4 = scmp.ge.s32.totalorder %s716_s21, 2  ;;  %s474_s25 = scalar_lea.sflag [#allocation4], %s473_s12 }
 0x2fd   : > { %p577_p5 = pnand %p945_p4, %p944_p13 }
 0x2ff   : > { %p578_p7 = pneg %p577_p5 }
 0x301   : > { %699 = dma.done.wait (%p578_p7), %s474_s25, 256  }
 0x302   : > { %701 = vsyncadd (%p578_p7), %s474_s25, 4294967040  ;;  %p18_p8 = scmp.ge.s32.totalorder %s781_s24, 4   ;;  %s946_s18 = smov %s708_s19 }
 0x303   : > { %s947_s19 = smov %s712_s20  ;;  %s948_s20 = smov %s793_s27 }
 0x304   : > { %s949_s21 = smov %s781_s24  ;;  %20 = sbr.rel (!%p18_p8) target bundleno = 5 (0x5), region = 85 }
 0x309   :  { %479 = vsyncpa [#allocation3], 1 }
 0x30a   :  { %481 = vsyncpa [#allocation3 + $0x1], 1 }
 0x30b   :  { %482 = vsyncpa [#allocation4], 1 }
 0x30c   :  { %484 = vsyncpa [#allocation4 + $0x1], 1 }

</bundles_post_ra>
